<compile_context>
chip_gen: v7x
topology: tpu7x:2x2x1
jax: 0.10.0
libtpu: 0.0.40
codegen_flags: <defaults>
</compile_context>

<pallas_src>
import math

import jax
import jax.numpy as jnp
from jax import lax
from jax.experimental import pallas as pl
from jax.experimental.pallas import tpu as pltpu

EPOCHS_TOTAL = 20


def _round_up(x, m):
    return ((x + m - 1) // m) * m


# ---------------------------------------------------------------------------
# Fused Pallas kernel: one-hot epoch (table pre-folded) + merged sin/cos time
# embedding + 3-layer MLP, all in one pass, bf16 MXU dots / f32 accumulate.
# ---------------------------------------------------------------------------
def _fused_diffusion_kernel(
    inp_ref, freqs_ref,
    w1x_ref, wep_ref, w1t_ref, b1_ref,
    w2_ref, b2_ref, w3_ref, b3_ref,
    out_ref,
):
    inp = inp_ref[...]                                  # (TB, dim_x + 2) f32
    tb = inp.shape[0]
    dim_x = inp.shape[1] - 2
    embed_dim = freqs_ref.shape[1]
    half = embed_dim // 2

    x = inp[:, :dim_x]                                  # (TB, dim_x)
    t = inp[:, dim_x:dim_x + 1]                         # (TB, 1)
    eidx = inp[:, dim_x + 1:dim_x + 2].astype(jnp.int32)  # (TB, 1), exact

    # --- epoch one-hot; embedding table already folded into wep at pack time
    iota = lax.broadcasted_iota(jnp.int32, (tb, EPOCHS_TOTAL), 1)
    onehot = (iota == eidx).astype(jnp.bfloat16)        # (TB, 20)

    # --- merged sinusoidal time embedding (EUP sin/cos, single activation) --
    # freqs_ref holds the half-dim freqs duplicated to full embed_dim width:
    # lanes [0, half) -> sin(angles), lanes [half, embed_dim) -> cos(angles).
    angles = t * freqs_ref[...]                          # (TB, embed_dim) f32
    lane = lax.broadcasted_iota(jnp.int32, (tb, embed_dim), 1)
    trig = jnp.where(lane < half, jnp.sin(angles), jnp.cos(angles))

    # --- layer 1: three split-K partial dots (concat + gather eliminated) ---
    h = jnp.dot(x.astype(jnp.bfloat16), w1x_ref[...],
                preferred_element_type=jnp.float32)
    h = h + jnp.dot(onehot, wep_ref[...], preferred_element_type=jnp.float32)
    h = h + jnp.dot(trig.astype(jnp.bfloat16), w1t_ref[...],
                    preferred_element_type=jnp.float32)
    h = jnp.maximum(h + b1_ref[...], 0.0)                # ReLU (f32 VPU)

    # --- layer 2 -------------------------------------------------------------
    h = jnp.dot(h.astype(jnp.bfloat16), w2_ref[...],
                preferred_element_type=jnp.float32)
    h = jnp.maximum(h + b2_ref[...], 0.0)                # ReLU

    # --- layer 3: output kept at true dim_x width (no padded-slab writeback) -
    out = jnp.dot(h.astype(jnp.bfloat16), w3_ref[...],
                  preferred_element_type=jnp.float32) + b3_ref[...]
    out_ref[...] = out.astype(out_ref.dtype)


# ---------------------------------------------------------------------------
# Parameter packing: split w1, fold embedding table, pad hidden dim to 128,
# cast dot weights to bf16 (biases/freqs stay f32 for exact elementwise math).
# ---------------------------------------------------------------------------
def pack_params(params, *, compute_dtype=jnp.bfloat16):
    emb = params["epoch_embedding"].astype(jnp.float32)
    w1, b1 = params["w1"], params["b1"]
    w2, b2 = params["w2"], params["b2"]
    w3, b3 = params["w3"], params["b3"]

    embed_dim = emb.shape[1]
    half = embed_dim // 2
    hidden = w1.shape[1]
    dim_x = w3.shape[1]
    h_pad = _round_up(hidden, 128)

    def pad_cols(w):
        return jnp.pad(w, ((0, 0), (0, h_pad - w.shape[1])))

    # row-split of w1 matches torch.cat([x, epoch_emb, sin, cos]) ordering
    w1x = pad_cols(w1[:dim_x])                                   # (dim_x, h_pad)
    w1e = pad_cols(w1[dim_x:dim_x + embed_dim])                  # (E, h_pad)
    w1t = pad_cols(w1[dim_x + embed_dim:dim_x + 2 * embed_dim])  # (E, h_pad)

    # Fold the embedding table into layer 1: onehot @ (emb @ w1e).
    w_epoch = emb @ w1e                                          # (20, h_pad) f32

    w2p = jnp.pad(w2, ((0, h_pad - hidden), (0, h_pad - hidden)))
    w3p = jnp.pad(w3, ((0, h_pad - hidden), (0, 0)))             # (h_pad, dim_x)

    freqs_half = jnp.exp(
        -math.log(10000.0) * jnp.arange(half, dtype=jnp.float32) / half)
    freqs_dup = jnp.concatenate([freqs_half, freqs_half]).reshape(1, embed_dim)

    return {
        "freqs": freqs_dup,                                       # f32
        "w1x": w1x.astype(compute_dtype),
        "w_epoch": w_epoch.astype(compute_dtype),
        "w1t": w1t.astype(compute_dtype),
        "b1": jnp.pad(b1, (0, h_pad - hidden)).reshape(1, h_pad).astype(jnp.float32),
        "w2": w2p.astype(compute_dtype),
        "b2": jnp.pad(b2, (0, h_pad - hidden)).reshape(1, h_pad).astype(jnp.float32),
        "w3": w3p.astype(compute_dtype),
        "b3": b3.reshape(1, dim_x).astype(jnp.float32),
        "dim_x": dim_x,
        "embed_dim": embed_dim,
    }


# ---------------------------------------------------------------------------
# Forward wrapper
# ---------------------------------------------------------------------------
def diffusion_forward(packed, x_t, t, epoch_idx, *, tile_b=512):
    B, dim_x = x_t.shape
    embed_dim = packed["embed_dim"]
    h_pad = packed["w2"].shape[0]

    # Pack the three per-row inputs into one (B, dim_x + 2) f32 array:
    # [x | t | epoch_idx] -> a single per-step DMA.
    eidx = jnp.clip(epoch_idx.astype(jnp.int32), 0, EPOCHS_TOTAL - 1)
    inp = jnp.concatenate(
        [x_t.astype(jnp.float32),
         t.astype(jnp.float32).reshape(-1, 1),
         eidx.astype(jnp.float32).reshape(-1, 1)], axis=-1)

    # Batch tile: multiple of 8 sublanes, default up to 512 rows; ensure at
    # least 2 grid steps when possible so both v7x TensorCores get work.
    tb = min(tile_b, _round_up(B, 8))
    if _round_up(B, tb) // tb < 2 and tb > 8:
        tb = _round_up((B + 1) // 2, 8)
    b_pad = _round_up(B, tb)
    inp_p = jnp.pad(inp, ((0, b_pad - B), (0, 0)))

    grid = (b_pad // tb,)
    batch_map = lambda i: (i, 0)   # batch-tiled, streams through the grid
    const_map = lambda i: (0, 0)   # weights/tables stay VMEM-resident

    # Cost estimate (advisory)
    flops = 2 * b_pad * (
        dim_x * h_pad + EPOCHS_TOTAL * h_pad + embed_dim * h_pad
        + h_pad * h_pad + h_pad * dim_x)
    transcendentals = 2 * b_pad * embed_dim
    weight_keys = ("freqs", "w1x", "w_epoch", "w1t", "b1", "w2", "b2", "w3", "b3")
    resident_bytes = sum(
        int(packed[k].size) * packed[k].dtype.itemsize for k in weight_keys)
    bytes_accessed = (resident_bytes
                      + 4 * inp_p.size
                      + 4 * b_pad * dim_x)

    # VMEM limit from actual footprint (weights + double-buffered row tiles),
    # with generous headroom; stays well under v7x's 64 MiB physical VMEM.
    tile_bytes = 2 * (tb * (dim_x + 2) * 4 + tb * dim_x * 4)
    vmem_limit = int(min(64 * 1024 * 1024,
                         max(8 * 1024 * 1024, 4 * (resident_bytes + tile_bytes))))

    out_padded = pl.pallas_call(
        _fused_diffusion_kernel,
        out_shape=jax.ShapeDtypeStruct((b_pad, dim_x), jnp.float32),
        grid=grid,
        in_specs=[
            pl.BlockSpec((tb, dim_x + 2), batch_map),
            pl.BlockSpec((1, embed_dim), const_map),
            pl.BlockSpec((dim_x, h_pad), const_map),
            pl.BlockSpec((EPOCHS_TOTAL, h_pad), const_map),
            pl.BlockSpec((embed_dim, h_pad), const_map),
            pl.BlockSpec((1, h_pad), const_map),
            pl.BlockSpec((h_pad, h_pad), const_map),
            pl.BlockSpec((1, h_pad), const_map),
            pl.BlockSpec((h_pad, dim_x), const_map),
            pl.BlockSpec((1, dim_x), const_map),
        ],
        out_specs=pl.BlockSpec((tb, dim_x), batch_map),
        compiler_params=pltpu.CompilerParams(
            dimension_semantics=("parallel",),
            vmem_limit_bytes=vmem_limit,
        ),
        cost_estimate=pl.CostEstimate(
            flops=flops,
            transcendentals=transcendentals,
            bytes_accessed=bytes_accessed,
        ),
    )(
        inp_p, packed["freqs"],
        packed["w1x"], packed["w_epoch"], packed["w1t"], packed["b1"],
        packed["w2"], packed["b2"], packed["w3"], packed["b3"],
    )
    # Only the padded batch rows get sliced away (output width is already dim_x).
    return out_padded if b_pad == B else out_padded[:B]


# ---------------------------------------------------------------------------
# Init + pure-JAX reference (mirrors the PyTorch module exactly, f32)
# ---------------------------------------------------------------------------
def init_params(key, dim_x, embed_dim, hidden_dim):
    input_dim = dim_x + embed_dim + embed_dim
    ks = jax.random.split(key, 7)

    def lin_w(kw, fan_in, fan_out):
        bound = 1.0 / math.sqrt(fan_in)
        return jax.random.uniform(kw, (fan_in, fan_out), jnp.float32, -bound, bound)

    return {
        "epoch_embedding": jax.random.normal(
            ks[0], (EPOCHS_TOTAL, embed_dim), jnp.float32),
        "w1": lin_w(ks[1], input_dim, hidden_dim),
        "b1": jax.random.uniform(ks[2], (hidden_dim,), jnp.float32,
                                 -1.0 / math.sqrt(input_dim),
                                 1.0 / math.sqrt(input_dim)),
        "w2": lin_w(ks[3], hidden_dim, hidden_dim),
        "b2": jax.random.uniform(ks[4], (hidden_dim,), jnp.float32,
                                 -1.0 / math.sqrt(hidden_dim),
                                 1.0 / math.sqrt(hidden_dim)),
        "w3": lin_w(ks[5], hidden_dim, dim_x),
        "b3": jax.random.uniform(ks[6], (dim_x,), jnp.float32,
                                 -1.0 / math.sqrt(hidden_dim),
                                 1.0 / math.sqrt(hidden_dim)),
    }


def sinusoidal_embedding(t, embed_dim):
    half_dim = embed_dim // 2
    freqs = jnp.exp(
        -math.log(10000.0) * jnp.arange(half_dim, dtype=jnp.float32) / half_dim)
    angles = t.astype(jnp.float32)[:, None] * freqs[None, :]
    return jnp.concatenate([jnp.sin(angles), jnp.cos(angles)], axis=-1)


def reference_forward(params, x_t, t, epoch_idx):
    embed_dim = params["epoch_embedding"].shape[1]
    epoch_emb = params["epoch_embedding"][epoch_idx]
    t_emb = sinusoidal_embedding(t, embed_dim)
    inp = jnp.concatenate([x_t, epoch_emb, t_emb], axis=-1)
    h = jnp.maximum(inp @ params["w1"] + params["b1"], 0.0)
    h = jnp.maximum(h @ params["w2"] + params["b2"], 0.0)
    return h @ params["w3"] + params["b3"]


if __name__ == "__main__":
    # Small deterministic shapes; B=16 exercises the >=2-grid-step path.
    B, dim_x, embed_dim, hidden_dim = 16, 4, 8, 32

    key = jax.random.PRNGKey(0)
    k_params, k_x, k_t, k_e = jax.random.split(key, 4)

    raw_params = init_params(k_params, dim_x, embed_dim, hidden_dim)
    packed_params = pack_params(raw_params)   # fold/split/pad/cast once

    x_t = jax.random.normal(k_x, (B, dim_x), jnp.float32)
    t = jax.random.randint(k_t, (B,), 0, 1000).astype(jnp.float32)
    epoch_idx = jax.random.randint(k_e, (B,), 0, EPOCHS_TOTAL)

    out = diffusion_forward(packed_params, x_t, t, epoch_idx)
    out = jax.block_until_ready(out)

    ref = reference_forward(raw_params, x_t, t, epoch_idx)
    assert out.shape == (B, dim_x)
    # bf16 dot operands (f32 accumulate) -> relaxed tolerance vs the f32 ref.
    max_err = float(jnp.max(jnp.abs(out - ref)))
    assert jnp.allclose(out, ref, atol=5e-2, rtol=5e-2), max_err

    print("KERNEL_OK")
</pallas_src>

<mosaic_0001>
module attributes {stable_mosaic.version = 11 : i64} {
  func.func @_fused_diffusion_kernel(%arg0: i32, %arg1: memref<8x6xf32, #tpu.memory_space<vmem>>, %arg2: memref<1x8xf32, #tpu.memory_space<vmem>>, %arg3: memref<4x128xbf16, #tpu.memory_space<vmem>>, %arg4: memref<20x128xbf16, #tpu.memory_space<vmem>>, %arg5: memref<8x128xbf16, #tpu.memory_space<vmem>>, %arg6: memref<1x128xf32, #tpu.memory_space<vmem>>, %arg7: memref<128x128xbf16, #tpu.memory_space<vmem>>, %arg8: memref<1x128xf32, #tpu.memory_space<vmem>>, %arg9: memref<128x4xbf16, #tpu.memory_space<vmem>>, %arg10: memref<1x4xf32, #tpu.memory_space<vmem>>, %arg11: memref<8x4xf32, #tpu.memory_space<vmem>>) attributes {dimension_semantics = [#tpu.dimension_semantics<parallel>], iteration_bounds = array<i64: 2>, scalar_prefetch = 0 : i64, scratch_operands = 0 : i64, tpu.core_type = #tpu.core_type<tc>, window_params = [{transform_indices = @transform_0, window_bounds = array<i64: 8, 6>}, {pipeline_mode = #tpu.pipeline_mode<synchronous>, transform_indices = @transform_1, window_bounds = array<i64: 1, 8>}, {pipeline_mode = #tpu.pipeline_mode<synchronous>, transform_indices = @transform_2, window_bounds = array<i64: 4, 128>}, {pipeline_mode = #tpu.pipeline_mode<synchronous>, transform_indices = @transform_3, window_bounds = array<i64: 20, 128>}, {pipeline_mode = #tpu.pipeline_mode<synchronous>, transform_indices = @transform_4, window_bounds = array<i64: 8, 128>}, {pipeline_mode = #tpu.pipeline_mode<synchronous>, transform_indices = @transform_5, window_bounds = array<i64: 1, 128>}, {pipeline_mode = #tpu.pipeline_mode<synchronous>, transform_indices = @transform_6, window_bounds = array<i64: 128, 128>}, {pipeline_mode = #tpu.pipeline_mode<synchronous>, transform_indices = @transform_7, window_bounds = array<i64: 1, 128>}, {pipeline_mode = #tpu.pipeline_mode<synchronous>, transform_indices = @transform_8, window_bounds = array<i64: 128, 4>}, {pipeline_mode = #tpu.pipeline_mode<synchronous>, transform_indices = @transform_9, window_bounds = array<i64: 1, 4>}, {transform_indices = @transform_10, window_bounds = array<i64: 8, 4>}]} {
    %c0 = arith.constant 0 : index
    %c0_0 = arith.constant 0 : index
    %0 = vector.load %arg1[%c0, %c0_0] : memref<8x6xf32, #tpu.memory_space<vmem>>, vector<8x6xf32>
    %1 = vector.extract_strided_slice %0 {offsets = [0, 0], sizes = [8, 4], strides = [1, 1]} : vector<8x6xf32> to vector<8x4xf32>
    %2 = vector.extract_strided_slice %0 {offsets = [0, 4], sizes = [8, 1], strides = [1, 1]} : vector<8x6xf32> to vector<8x1xf32>
    %3 = vector.extract_strided_slice %0 {offsets = [0, 5], sizes = [8, 1], strides = [1, 1]} : vector<8x6xf32> to vector<8x1xf32>
    %4 = arith.fptosi %3 : vector<8x1xf32> to vector<8x1xi32>
    %5 = tpu.iota {dimensions = array<i32: 1>} : vector<8x20xi32>
    %6 = vector.broadcast %4 : vector<8x1xi32> to vector<8x20xi32>
    %7 = arith.cmpi eq, %5, %6 : vector<8x20xi32>
    %8 = arith.extui %7 : vector<8x20xi1> to vector<8x20xi32>
    %9 = arith.sitofp %8 : vector<8x20xi32> to vector<8x20xf32>
    %10 = arith.truncf %9 : vector<8x20xf32> to vector<8x20xbf16>
    %c0_1 = arith.constant 0 : index
    %c0_2 = arith.constant 0 : index
    %11 = vector.load %arg2[%c0_1, %c0_2] : memref<1x8xf32, #tpu.memory_space<vmem>>, vector<1x8xf32>
    %12 = vector.broadcast %2 : vector<8x1xf32> to vector<8x8xf32>
    %13 = vector.broadcast %11 : vector<1x8xf32> to vector<8x8xf32>
    %14 = arith.mulf %12, %13 : vector<8x8xf32>
    %15 = tpu.iota {dimensions = array<i32: 1>} : vector<8x8xi32>
    %c4_i32 = arith.constant 4 : i32
    %16 = vector.broadcast %c4_i32 : i32 to vector<8x8xi32>
    %17 = arith.cmpi slt, %15, %16 : vector<8x8xi32>
    %18 = math.sin %14 : vector<8x8xf32>
    %19 = math.cos %14 : vector<8x8xf32>
    %20 = arith.select %17, %18, %19 : vector<8x8xi1>, vector<8x8xf32>
    %21 = arith.truncf %1 : vector<8x4xf32> to vector<8x4xbf16>
    %c0_3 = arith.constant 0 : index
    %c0_4 = arith.constant 0 : index
    %22 = vector.load %arg3[%c0_3, %c0_4] : memref<4x128xbf16, #tpu.memory_space<vmem>>, vector<4x128xbf16>
    %cst = arith.constant dense<0.000000e+00> : vector<8x128xf32>
    %23 = tpu.matmul %21, %22, %cst {dimension_numbers = #tpu.dot_dimension_numbers<[1], [0], [0], [1], [0, 0, 1, 1], [], []>} : vector<8x4xbf16>, vector<4x128xbf16>, vector<8x128xf32> -> vector<8x128xf32>
    %c0_5 = arith.constant 0 : index
    %c0_6 = arith.constant 0 : index
    %24 = vector.load %arg4[%c0_5, %c0_6] : memref<20x128xbf16, #tpu.memory_space<vmem>>, vector<20x128xbf16>
    %cst_7 = arith.constant dense<0.000000e+00> : vector<8x128xf32>
    %25 = tpu.matmul %10, %24, %cst_7 {dimension_numbers = #tpu.dot_dimension_numbers<[1], [0], [0], [1], [0, 0, 1, 1], [], []>} : vector<8x20xbf16>, vector<20x128xbf16>, vector<8x128xf32> -> vector<8x128xf32>
    %26 = arith.addf %23, %25 : vector<8x128xf32>
    %27 = arith.truncf %20 : vector<8x8xf32> to vector<8x8xbf16>
    %c0_8 = arith.constant 0 : index
    %c0_9 = arith.constant 0 : index
    %28 = vector.load %arg5[%c0_8, %c0_9] : memref<8x128xbf16, #tpu.memory_space<vmem>>, vector<8x128xbf16>
    %cst_10 = arith.constant dense<0.000000e+00> : vector<8x128xf32>
    %29 = tpu.matmul %27, %28, %cst_10 {dimension_numbers = #tpu.dot_dimension_numbers<[1], [0], [0], [1], [0, 0, 1, 1], [], []>} : vector<8x8xbf16>, vector<8x128xbf16>, vector<8x128xf32> -> vector<8x128xf32>
    %30 = arith.addf %26, %29 : vector<8x128xf32>
    %c0_11 = arith.constant 0 : index
    %c0_12 = arith.constant 0 : index
    %31 = vector.load %arg6[%c0_11, %c0_12] : memref<1x128xf32, #tpu.memory_space<vmem>>, vector<1x128xf32>
    %32 = vector.broadcast %31 : vector<1x128xf32> to vector<8x128xf32>
    %33 = arith.addf %30, %32 : vector<8x128xf32>
    %cst_13 = arith.constant 0.000000e+00 : f32
    %34 = vector.broadcast %cst_13 : f32 to vector<8x128xf32>
    %35 = arith.maximumf %33, %34 : vector<8x128xf32>
    %36 = arith.truncf %35 : vector<8x128xf32> to vector<8x128xbf16>
    %c0_14 = arith.constant 0 : index
    %c0_15 = arith.constant 0 : index
    %37 = vector.load %arg7[%c0_14, %c0_15] : memref<128x128xbf16, #tpu.memory_space<vmem>>, vector<128x128xbf16>
    %cst_16 = arith.constant dense<0.000000e+00> : vector<8x128xf32>
    %38 = tpu.matmul %36, %37, %cst_16 {dimension_numbers = #tpu.dot_dimension_numbers<[1], [0], [0], [1], [0, 0, 1, 1], [], []>} : vector<8x128xbf16>, vector<128x128xbf16>, vector<8x128xf32> -> vector<8x128xf32>
    %c0_17 = arith.constant 0 : index
    %c0_18 = arith.constant 0 : index
    %39 = vector.load %arg8[%c0_17, %c0_18] : memref<1x128xf32, #tpu.memory_space<vmem>>, vector<1x128xf32>
    %40 = vector.broadcast %39 : vector<1x128xf32> to vector<8x128xf32>
    %41 = arith.addf %38, %40 : vector<8x128xf32>
    %cst_19 = arith.constant 0.000000e+00 : f32
    %42 = vector.broadcast %cst_19 : f32 to vector<8x128xf32>
    %43 = arith.maximumf %41, %42 : vector<8x128xf32>
    %44 = arith.truncf %43 : vector<8x128xf32> to vector<8x128xbf16>
    %c0_20 = arith.constant 0 : index
    %c0_21 = arith.constant 0 : index
    %45 = vector.load %arg9[%c0_20, %c0_21] : memref<128x4xbf16, #tpu.memory_space<vmem>>, vector<128x4xbf16>
    %cst_22 = arith.constant dense<0.000000e+00> : vector<8x4xf32>
    %46 = tpu.matmul %44, %45, %cst_22 {dimension_numbers = #tpu.dot_dimension_numbers<[1], [0], [0], [1], [0, 0, 1, 1], [], []>} : vector<8x128xbf16>, vector<128x4xbf16>, vector<8x4xf32> -> vector<8x4xf32>
    %c0_23 = arith.constant 0 : index
    %c0_24 = arith.constant 0 : index
    %47 = vector.load %arg10[%c0_23, %c0_24] : memref<1x4xf32, #tpu.memory_space<vmem>>, vector<1x4xf32>
    %48 = vector.broadcast %47 : vector<1x4xf32> to vector<8x4xf32>
    %49 = arith.addf %46, %48 : vector<8x4xf32>
    %c0_25 = arith.constant 0 : index
    %c0_26 = arith.constant 0 : index
    %50 = vector.load %arg11[%c0_25, %c0_26] : memref<8x4xf32, #tpu.memory_space<vmem>>, vector<8x4xf32>
    tpu.vector_store %arg11[%c0_25, %c0_26], %49 {strides = array<i32>} : memref<8x4xf32, #tpu.memory_space<vmem>>, vector<8x4xf32>,
    return
  }
  func.func @transform_0(%arg0: i32) -> (i32, i32) {
    %c0_i32 = arith.constant 0 : i32
    %c0_i32_0 = arith.constant 0 : i32
    return %arg0, %c0_i32 : i32, i32
  }
  func.func @transform_1(%arg0: i32) -> (i32, i32) {
    %c0_i32 = arith.constant 0 : i32
    %c0_i32_0 = arith.constant 0 : i32
    %c0_i32_1 = arith.constant 0 : i32
    return %c0_i32, %c0_i32_0 : i32, i32
  }
  func.func @transform_2(%arg0: i32) -> (i32, i32) {
    %c0_i32 = arith.constant 0 : i32
    %c0_i32_0 = arith.constant 0 : i32
    %c0_i32_1 = arith.constant 0 : i32
    return %c0_i32, %c0_i32_0 : i32, i32
  }
  func.func @transform_3(%arg0: i32) -> (i32, i32) {
    %c0_i32 = arith.constant 0 : i32
    %c0_i32_0 = arith.constant 0 : i32
    %c0_i32_1 = arith.constant 0 : i32
    return %c0_i32, %c0_i32_0 : i32, i32
  }
  func.func @transform_4(%arg0: i32) -> (i32, i32) {
    %c0_i32 = arith.constant 0 : i32
    %c0_i32_0 = arith.constant 0 : i32
    %c0_i32_1 = arith.constant 0 : i32
    return %c0_i32, %c0_i32_0 : i32, i32
  }
  func.func @transform_5(%arg0: i32) -> (i32, i32) {
    %c0_i32 = arith.constant 0 : i32
    %c0_i32_0 = arith.constant 0 : i32
    %c0_i32_1 = arith.constant 0 : i32
    return %c0_i32, %c0_i32_0 : i32, i32
  }
  func.func @transform_6(%arg0: i32) -> (i32, i32) {
    %c0_i32 = arith.constant 0 : i32
    %c0_i32_0 = arith.constant 0 : i32
    %c0_i32_1 = arith.constant 0 : i32
    return %c0_i32, %c0_i32_0 : i32, i32
  }
  func.func @transform_7(%arg0: i32) -> (i32, i32) {
    %c0_i32 = arith.constant 0 : i32
    %c0_i32_0 = arith.constant 0 : i32
    %c0_i32_1 = arith.constant 0 : i32
    return %c0_i32, %c0_i32_0 : i32, i32
  }
  func.func @transform_8(%arg0: i32) -> (i32, i32) {
    %c0_i32 = arith.constant 0 : i32
    %c0_i32_0 = arith.constant 0 : i32
    %c0_i32_1 = arith.constant 0 : i32
    return %c0_i32, %c0_i32_0 : i32, i32
  }
  func.func @transform_9(%arg0: i32) -> (i32, i32) {
    %c0_i32 = arith.constant 0 : i32
    %c0_i32_0 = arith.constant 0 : i32
    %c0_i32_1 = arith.constant 0 : i32
    return %c0_i32, %c0_i32_0 : i32, i32
  }
  func.func @transform_10(%arg0: i32) -> (i32, i32) {
    %c0_i32 = arith.constant 0 : i32
    %c0_i32_0 = arith.constant 0 : i32
    return %arg0, %c0_i32 : i32, i32
  }
}

</mosaic_0001>

<bundles_post_ra>
// kernel: tpu_custom_call.1
= control target key start
LH: loop header
LB: loop body
LE: loop exit
PB: predicated region body
PF: predicated region fallthrough
CT: control target
= control target key end

     0   :  { %s1287_s13 = smov 0   ;;  %s1443_s0 = inlined_call_operand.vmem [shape: f32[16,6], index: 0, kind: input, shape index: {}]   ;;  %s1444_s1 = inlined_call_operand.vmem [shape: f32[1,8], index: 1, kind: input, shape index: {}]   ;;  %s1445_s2 = inlined_call_operand.vmem [shape: bf16[4,128], index: 2, kind: input, shape index: {}]   ;;  %s1446_s3 = inlined_call_operand.vmem [shape: bf16[20,128], index: 3, kind: input, shape index: {}]   ;;  %s1447_s4 = inlined_call_operand.vmem [shape: bf16[8,128], index: 4, kind: input, shape index: {}]   ;;  %s1448_s5 = inlined_call_operand.vmem [shape: f32[1,128], index: 5, kind: input, shape index: {}]   ;;  %s1449_s6 = inlined_call_operand.vmem [shape: bf16[128,128], index: 6, kind: input, shape index: {}]   ;;  %s1450_s7 = inlined_call_operand.vmem [shape: f32[1,128], index: 7, kind: input, shape index: {}]   ;;  %s1451_s8 = inlined_call_operand.vmem [shape: bf16[128,4], index: 8, kind: input, shape index: {}]   ;;  %s1452_s9 = inlined_call_operand.vmem [shape: f32[1,4], index: 9, kind: input, shape index: {}]   ;;  %s1453_s10 = inlined_call_operand.vmem [shape: f32[16,4], index: 10, kind: output, shape index: {}]  }
   0x1 LB: > { %s1037_s14 = sadd.s32 4294967295, %s1220_s13   ;;  %p1041_p0 = scmp.ge.s32.totalorder %s1220_s13, 1  ;;  %s1220_s13 = sphi %s1287_s13, %s20_s13  }
   0x2   : > { %p311_p1 = scmp.lt.s32.totalorder %s1220_s13, 3 }
   0x4   : > { %p312_p2 = pnand %p1041_p0, %p311_p1 }
   0x5   : > { %p347_p3 = scmp.lt.s32.totalorder (!%p312_p2), %s1037_s14, 1  ;;  %v1222_v0 = vmov (!%p312_p2), 4   ;;  %v1223_v4 = vmov (!%p312_p2), 5   ;;  %v1192_v5 = vld [vmem:[%s1446_s3] sm:$0xff] (!%p312_p2)   ;;  %vm607_vm0 = vcmask (!%p312_p2), 1041408   ;;  %v1224_v7 = vmov (!%p312_p2), 0.0  }
   0x6   : > { %315 = sbr.rel (%p312_p2) target bundleno = 882 (0x372), region = 60  ;;  %1189 = vset.pattern.permute.xlu0 (!%p312_p2), %v1222_v0  ;;  %v590_v6 = vld [vmem:[%s1445_s2] sm:$0x3] (!%p312_p2)  ;;  %1105 = vmatprep.subr.bf16.mxu0 (!%p312_p2), %v1224_v7  ;;  %v1193_v10 = vld [vmem:[%s1446_s3 + $0x8] ss:$0 sps:$4 sm:$0x33] (!%p312_p2)   ;;  %v358_v15 = vlaneseq (!%p312_p2) }
   0x7   : > { %1113 = vmatprep.subr.bf16.mxu1 (!%p312_p2), %v1224_v7  ;;  %v656_v8 = vsel (!%p312_p2), %vm607_vm0, %v590_v6, 0  ;;  %1106 = vmatpush3.bf16.msra.mxu0 (!%p312_p2), %v1192_v5  ;;  %vm1225_vm1 = vmmov (!%p312_p2), 0   ;;  %v609_v11 = vsel (!%p312_p2), %vm607_vm0, %v1193_v10, 0  ;;  %vm651_vm2 = vcmask (!%p312_p2), 31744   ;;  %v699_v12 = vld [vmem:[%s1447_s4] sm:$0xf] (!%p312_p2) }
   0x8   : > { %1114 = vmatpush3.bf16.msra.mxu1 (!%p312_p2), %v656_v8  ;;  %1107 = vmatprep.subr.bf16.mxu0 (!%p312_p2), %v1224_v7  ;;  %vm704_vm3 = vcmask (!%p312_p2), 1043456   ;;  %v1045_v14 = vld [vmem:[%s1444_s1] ss:$0 sm:$0xff] (!%p312_p2)  ;;  %v1333_v18 = vand.u32 (!%p312_p2), 127, %v358_v15  ;;  %vm603_vm5 = vcmask (!%p312_p2), 162816   ;;  %v1195_v28 = vld [vmem:[%s1449_s6 + $0x8] sm:$0xff] (!%p312_p2)  }
   0x9   : > { %1119 = vmatprep.subr.bf16.mxu1 (!%p312_p2), %v1224_v7  ;;  %1115 = vmatprep.mubr.msk.bf16.mxu1 (!%p312_p2), %vm1225_vm1, %v1224_v7  ;;  %v706_v13 = vsel (!%p312_p2), %vm704_vm3, %v699_v12, 0  ;;  %v1194_v24 = vld [vmem:[%s1449_s6] sm:$0xff] (!%p312_p2)   ;;  %v1196_v33 = vld [vmem:[%s1449_s6 + $0x10] sm:$0xff] (!%p312_p2)   ;;  %v1226_v35 = vmov (!%p312_p2), 683565275  }
   0xa   : > { %1109 = vmatprep.mubr.msk.bf16.mxu0 (!%p312_p2), %vm1225_vm1, %v1224_v7  ;;  %v1227_v37 = vmov (!%p312_p2), 2475754826   ;;  %v1228_v40 = vmov (!%p312_p2), 2131351028   ;;  %v1229_v43 = vmov (!%p312_p2), 2102212464  }
   0xb   : > { %1108 = vmatpush3.bf16.msra.mxu0 (!%p312_p2), %v609_v11  ;;  %v1230_v46 = vmov (!%p312_p2), 920167782   ;;  %v1231_v49 = vmov (!%p312_p2), 1326507024   ;;  %vm380_vm15 = vcmp.lt.s32.totalorder (!%p312_p2), %v1333_v18, 4 }
   0xc   : > { %1125 = vmatprep.subr.bf16.mxu0 (!%p312_p2), %v1224_v7 }
   0xd   : > { %s1455_s14 = smov (!%p347_p3, %s1037_s14), 1 }
   0xe   : > { %s1042_s15 = sshll.u32 %s1455_s14, 3 }
   0xf   : > { %s350_s18 = scalar_lea.vmem %s1443_s0, %s1042_s15 }
  0x10   : > { %v356_v1 = vld [vmem:[%s350_s18] sm:$0xff]  ;;  %s354_s18 = scalar_lea.vmem %s1453_s10, %s1042_s15 }
  0x11   : > { %370 = vperm.xlu0 %1189, %v356_v1   ;;  %v1165_v2 = vtrunc.f32 %v356_v1  ;;  %v589_v9 = vpack.c.bf16 %v356_v1, %v356_v1 }
  0x13   : > { %v1166_v3 = vcvt.f32.s32 %v1165_v2  ;;  %1116 = vmatmul.mubr.msk.bf16.vlgmr.msra.gmra.mrb[0].mxu1 %vm651_vm2, %v589_v9 }
  0x14   : > { %1121 = vmatprep.mubr.msk.bf16.mxu1 %vm1225_vm1, %v1224_v7  ;;  %1120 = vmatpush3.bf16.msra.mxu1 %v706_v13 }
  0x15   : > { %1190 = vset.pattern.permute.xlu0 %v1223_v4  ;;  %1145 = vmatprep.subr.bf16.mxu1 %v1224_v7 }
  0x16   : > { %361 = vperm.xlu0 %1190, %v1166_v3  }
  0x1a   : > { %1191 = vset.pattern.permute.xlu0 %v1222_v0 }
  0x90   : > { %v371_v16 = vpop.permute.xlu0 %370 }
  0x91   : > { %v1331_v17 = vmul.f32 %v1045_v14, %v371_v16 }
  0x93   : > { %v384_v19 = vand.u32 2139095040, %v1331_v17  ;;  %v381_v27 = vand.u32 2147483647, %v1331_v17  ;;  %vm383_vm13 = vcmp.lt.s32.totalorder %v1331_v17, 0 }
  0x95   : > { %v385_v20 = vshrl.u32 %v384_v19, 23  ;;  %v362_v21 = vpop.permute.xlu0 %361  ;;  %v388_v31 = vand.u32 8388607, %v381_v27  ;;  %v1197_v19 = vld [vmem:[%s1449_s6 + $0x18] sm:$0xff]   ;;  %vm382_vm14 = vcmp.le.f32.partialorder %v381_v27, 0.7853982 }
  0x96   : > { %vm363_vm4 = vcmp.eq.s32.totalorder %v1333_v18, %v362_v21 }
  0x97   : > { %v1046_v22 = vadd.s32 4294967169, %v385_v20  ;;  %v1044_v23 = vsel %vm363_vm4, 1.0, %v1224_v7  ;;  %v389_v51 = vor.u32 8388608, %v388_v31 }
  0x98   : > { %v366_v25 = vpack.c.bf16 %v1044_v23, %v1044_v23 }
  0x99   : > { %v391_v26 = vadd.s32 1, %v1046_v22  ;;  %v429_v1 = vshll.u32 %v389_v51, 8 }
  0x9a   : > { %1110 = vmatmul.mubr.msk.bf16.vlgmr.msra.gmra.mrb[0].mxu0 %vm603_vm5, %v366_v25 }
  0x9b   : > { %vm392_vm6 = vcmp.gt.s32.totalorder %v391_v26, 0  ;;  %1126 = vmatpush3.bf16.msra.mxu0 %v1194_v24  ;;  %1141 = vmatprep.mubr.msk.bf16.mxu0 %vm1225_vm1, %v1224_v7 }
  0x9c   : > { %v393_v29 = vsel %vm392_vm6, %v391_v26, 0  ;;  %1127 = vmatprep.subr.bf16.mxu0 %v1224_v7 }
  0x9d   : > { %v395_v30 = vand.u32 31, %v393_v29  ;;  %v394_v34 = vshrl.u32 %v393_v29, 5 }
  0x9f   : > { %v396_v32 = vsub.s32 32, %v395_v30  ;;  %1128 = vmatpush3.bf16.msra.mxu0 %v1195_v28  ;;  %v398_v36 = vshll.u32 %v1226_v35, %v395_v30  ;;  %v401_v38 = vshll.u32 %v1227_v37, %v395_v30  ;;  %v404_v42 = vshll.u32 %v1228_v40, %v395_v30 }
  0xa0   : > { %1129 = vmatprep.subr.bf16.mxu0 %v1224_v7  ;;  %v407_v45 = vshll.u32 %v1229_v43, %v395_v30  ;;  %v410_v48 = vshll.u32 %v1230_v46, %v395_v30  ;;  %vm413_vm7 = vcmp.lt.s32.totalorder %v394_v34, 1  ;;  %vm416_vm8 = vcmp.lt.s32.totalorder %v394_v34, 4 }
  0xa1   : > { %v399_v39 = vshrl.u32 %v1227_v37, %v396_v32  ;;  %v402_v41 = vshrl.u32 %v1228_v40, %v396_v32  ;;  %v405_v44 = vshrl.u32 %v1229_v43, %v396_v32  ;;  %v408_v47 = vshrl.u32 %v1230_v46, %v396_v32 }
  0xa2   : > { %v411_v50 = vshrl.u32 %v1231_v49, %v396_v32  ;;  %v397_v60 = vshrl.u32 %v1226_v35, %v396_v32  ;;  %vm415_vm9 = vcmp.lt.s32.totalorder %v394_v34, 3  ;;  %vm414_vm10 = vcmp.lt.s32.totalorder %v394_v34, 2 }
  0xa3   : > { %v400_v52 = vor.u32 %v399_v39, %v398_v36  ;;  %v403_v53 = vor.u32 %v402_v41, %v401_v38  ;;  %v406_v54 = vor.u32 %v405_v44, %v404_v42  ;;  %1130 = vmatpush3.bf16.msra.mxu0 %v1196_v33  ;;  %v409_v55 = vor.u32 %v408_v47, %v407_v45 }
  0xa4   : > { %v412_v56 = vor.u32 %v411_v50, %v410_v48  ;;  %1131 = vmatprep.subr.bf16.mxu0 %v1224_v7 }
  0xa5   : > { %v418_v57 = vsel %vm416_vm8, %v406_v54, 2102212464  ;;  %v421_v58 = vsel %vm413_vm7, %v400_v52, %v403_v53  ;;  %v425_v59 = vsel %vm413_vm7, %v403_v53, %v406_v54  ;;  %v422_v61 = vsel %vm416_vm8, %v409_v55, 920167782 }
  0xa6   : > { %v426_v62 = vsel %vm416_vm8, %v412_v56, 1326507024  ;;  %v423_v63 = vsel %vm415_vm9, %v406_v54, %v422_v61  ;;  %v417_v2 = vsel %vm413_vm7, %v397_v60, %v400_v52  ;;  %v419_v3 = vsel %vm415_vm9, %v403_v53, %v418_v57 }
  0xa7   : > { %v427_v0 = vsel %vm415_vm9, %v409_v55, %v426_v62  ;;  %v424_v4 = vsel %vm414_vm10, %v421_v58, %v423_v63  ;;  %v420_v11 = vsel %vm414_vm10, %v417_v2, %v419_v3  ;;  %1132 = vmatpush3.bf16.msra.mxu0 %v1197_v19  ;;  %vm473_vm8 = vweird.f32 %v1331_v17  ;;  %v1198_v63 = vld [vmem:[%s1449_s6 + $0x20] sm:$0xff]   ;;  %v1200_v3 = vld [vmem:[%s1449_s6 + $0x30] sm:$0xff]  }
  0xa8   : > { %v428_v5 = vsel %vm414_vm10, %v425_v59, %v427_v0  ;;  %v1358_v9 = vmul.u32.u64.low %v429_v1, %v424_v4  ;;  %v1359_v10 = vmul.u32.u64.high %v429_v1, %v424_v4, %v1358_v9  ;;  %v436_v13 = vmul.u32 %v429_v1, %v420_v11  ;;  %1133 = vmatprep.subr.bf16.mxu0 %v1224_v7  ;;  %v1201_v4 = vld [vmem:[%s1449_s6 + $0x38] sm:$0xff]   ;;  %v1207_v11 = vld [vmem:[%s1451_s8 + $0x28] sm:$0xff]  }
  0xa9   : > { %v1355_v6 = vmul.u32.u64.low %v429_v1, %v428_v5  ;;  %v1356_v8 = vmul.u32.u64.high %v429_v1, %v428_v5, %v1355_v6  ;;  %vm700_vm9 = vcmask 64512   ;;  %v1202_v5 = vld [vmem:[%s1451_s8] sm:$0xff]  }
  0xaa   : > { %v439_v12 = vadd.s32 1, %v1359_v10  ;;  %v1203_v6 = vld [vmem:[%s1451_s8 + $0x8] sm:$0xff]  }
  0xab   : > { %vm438_vm11 = vc.u32 %v1356_v8, %v1358_v9  ;;  %v437_v29 = vadd.s32 %v1358_v9, %v1356_v8  ;;  %1134 = vmatpush3.bf16.msra.mxu0 %v1198_v63  ;;  %v1204_v8 = vld [vmem:[%s1451_s8 + $0x10] sm:$0xff]   ;;  %v1205_v9 = vld [vmem:[%s1451_s8 + $0x18] sm:$0xff]  }
  0xac   : > { %v440_v14 = vsel %vm438_vm11, %v439_v12, %v1359_v10  ;;  %1135 = vmatprep.subr.bf16.mxu0 %v1224_v7  ;;  %v1206_v10 = vld [vmem:[%s1451_s8 + $0x20] sm:$0xff]  }
  0xad   : > { %v441_v15 = vadd.s32 %v440_v14, %v436_v13 }
  0xaf   : > { %v442_v16 = vadd.s32 536870912, %v441_v15 }
  0xb1   : > { %v443_v20 = vshrl.u32 %v442_v16, 30 }
  0xb3   : > { %v444_v21 = vshll.u32 %v443_v20, 30  ;;  %v467_v41 = vsub.s32 4, %v443_v20 }
  0xb5   : > { %v445_v22 = vsub.s32 %v441_v15, %v444_v21  ;;  %v468_v44 = vsel %vm383_vm13, %v467_v41, %v443_v20  ;;  %v1059_v20 = vld [vmem:[%s1448_s5] ss:$0 sm:$0xff] }
  0xb6   : > { %v470_v46 = vsel %vm382_vm14, 0, %v468_v44 }
  0xb7   : > { %v447_v23 = vsub.s32 0, %v445_v22  ;;  %v474_v47 = vadd.s32 3, %v470_v46  ;;  %v578_v49 = vand.u32 3, %v470_v46 }
  0xb9   : > { %v1047_v24 = vmin.u32 %v447_v23, %v445_v22  ;;  %v475_v48 = vand.u32 3, %v474_v47  ;;  %vm583_vm3 = vcmp.eq.s32.totalorder %v578_v49, 2  ;;  %vm580_vm5 = vcmp.eq.s32.totalorder %v578_v49, 0 }
  0xba   : > { %vm579_vm7 = vcmp.lt.s32.totalorder %v578_v49, 2 }
  0xbb   : > { %v449_v25 = vclz %v1047_v24  ;;  %vm480_vm0 = vcmp.eq.s32.totalorder %v475_v48, 2  ;;  %vm477_vm4 = vcmp.eq.s32.totalorder %v475_v48, 0  ;;  %vm476_vm6 = vcmp.lt.s32.totalorder %v475_v48, 2 }
  0xbd   : > { %v1048_v26 = vadd.s32 4294967294, %v449_v25 }
  0xbf   : > { %vm1049_vm12 = vcmp.lt.s32.totalorder %v1048_v26, 0 }
  0xc0   : > { %v452_v28 = vsel %vm1049_vm12, 0, %v1048_v26 }
  0xc1   : > { %v453_v30 = vsub.s32 32, %v452_v28  ;;  %v457_v31 = vsub.s32 4294967266, %v452_v28  ;;  %v454_v32 = vshll.u32 %v445_v22, %v452_v28 }
  0xc3   : > { %v455_v33 = vshrl.u32 %v437_v29, %v453_v30  ;;  %v458_v34 = vadd.s32 127, %v457_v31  ;;  %v1208_v29 = vld [vmem:[%s1451_s8 + $0x30] sm:$0xff]   ;;  %v1209_v30 = vld [vmem:[%s1451_s8 + $0x38] sm:$0xff]   ;;  %v1060_v31 = vld [vmem:[%s1450_s7] ss:$0 sm:$0xff] }
  0xc5   : > { %v456_v35 = vor.u32 %v455_v33, %v454_v32  ;;  %v459_v36 = vshll.u32 %v458_v34, 23 }
  0xc7   : > { %v460_v37 = vor.u32 4788187, %v459_v36  ;;  %v463_v39 = vcvt.s32.f32 %v456_v35 }
  0xc9   : > { %v461_v38 = vand.u32 2147483647, %v460_v37 }
  0xcb   : > { %v464_v40 = vmul.f32 %v463_v39, %v461_v38 }
  0xcd   : > { %v465_v42 = vxor.u32 2147483648, %v464_v40 }
  0xcf   : > { %v466_v43 = vsel %vm383_vm13, %v465_v42, %v464_v40 }
  0xd0   : > { %v469_v45 = vsel %vm382_vm14, %v1331_v17, %v466_v43  ;;  %v1199_v17 = vld [vmem:[%s1449_s6 + $0x28] sm:$0xff]  }
  0xd1   : > { %1210 = vcosq.f32 %v469_v45  ;;  %1136 = vmatpush3.bf16.msra.mxu0 %v1199_v17 }
  0xd2   : > { %1212 = vsinq.f32 %v469_v45  ;;  %1137 = vmatprep.subr.bf16.mxu0 %v1224_v7 }
  0xd5   : > { %1138 = vmatpush3.bf16.msra.mxu0 %v1200_v3 }
  0xd6   : > { %1139 = vmatprep.subr.bf16.mxu0 %v1224_v7 }
  0xd9   : > { %1140 = vmatpush3.bf16.msra.mxu0 %v1201_v4 }
  0xdb   : > { %v1211_v50 = vpop.eup %1210 }
  0xdc   : > { %v1213_v51 = vpop.eup %1212  ;;  %v481_v52 = vxor.u32 2147483648, %v1211_v50 }
  0xdd   : > { %v478_v53 = vxor.u32 2147483648, %v1213_v51 }
  0xde   : > { %v482_v27 = vsel %vm480_vm0, %v481_v52, %v1213_v51  ;;  %v585_v54 = vsel %vm583_vm3, %v481_v52, %v1213_v51 }
  0xdf   : > { %v479_v55 = vsel %vm477_vm4, %v1211_v50, %v478_v53  ;;  %v582_v56 = vsel %vm580_vm5, %v1211_v50, %v478_v53 }
  0xe0   : > { %v483_v57 = vsel %vm476_vm6, %v479_v55, %v482_v27  ;;  %v586_v58 = vsel %vm579_vm7, %v582_v56, %v585_v54 }
  0xe1   : > { %v484_v59 = vsel %vm473_vm8, nan, %v483_v57  ;;  %v587_v60 = vsel %vm473_vm8, nan, %v586_v58 }
  0xe2   : > { %v588_v61 = vsel %vm380_vm15, %v484_v59, %v587_v60 }
  0xe3   : > { %v698_v62 = vpack.c.bf16 %v588_v61, %v588_v61 }
  0xe5   : > { %1122 = vmatmul.mubr.msk.bf16.vlgmr.msra.gmra.mrb[4].mxu1 %vm700_vm9, %v698_v62 }
  0xe6   : > { %1161 = vmatprep.mubr.msk.bf16.mxu1 %vm1225_vm1, %v1224_v7  ;;  %v692_v18 = vpop.f32.mrb[0].mxu1  ;;  %1146 = vmatpush3.bf16.msra.mxu1 %v1202_v5 }
  0xe7   : > { %v1117_v0 = vpop.f32.mrb[1].mxu1  ;;  %1147 = vmatprep.subr.bf16.mxu1 %v1224_v7 }
  0xe8   : > { %v695_v1 = vpop.f32.mrb[2].mxu1 }
  0xe9   : > { %v1118_v2 = vpop.f32.mrb[3].mxu1 }
  0xea   : > { %1148 = vmatpush3.bf16.msra.mxu1 %v1203_v6 }
  0xeb   : > { %1149 = vmatprep.subr.bf16.mxu1 %v1224_v7 }
  0xee   : > { %1150 = vmatpush3.bf16.msra.mxu1 %v1204_v8 }
  0xef   : > { %1151 = vmatprep.subr.bf16.mxu1 %v1224_v7 }
  0xf2   : > { %1152 = vmatpush3.bf16.msra.mxu1 %v1205_v9 }
  0xf3   : > { %1153 = vmatprep.subr.bf16.mxu1 %v1224_v7 }
  0xf6   : > { %1154 = vmatpush3.bf16.msra.mxu1 %v1206_v10 }
  0xf7   : > { %1155 = vmatprep.subr.bf16.mxu1 %v1224_v7 }
  0xfa   : > { %1156 = vmatpush3.bf16.msra.mxu1 %v1207_v11 }
  0xfb   : > { %1157 = vmatprep.subr.bf16.mxu1 %v1224_v7 }
  0xfe   : > { %1158 = vmatpush3.bf16.msra.mxu1 %v1208_v29 }
  0xff   : > { %1159 = vmatprep.subr.bf16.mxu1 %v1224_v7  ;;  %v1069_v7 = vld [vmem:[%s1452_s9] ss:$0 sm:$0xff] }
 0x102   : > { %1160 = vmatpush3.bf16.msra.mxu1 %v1209_v30 }
 0x16d   : > { %v645_v12 = vpop.f32.mrb[0].mxu0 }
 0x16e   : > { %v693_v13 = vadd.f32 %v692_v18, %v645_v12  ;;  %v1111_v14 = vpop.f32.mrb[1].mxu0 }
 0x16f   : > { %v648_v15 = vpop.f32.mrb[2].mxu0 }
 0x170   : > { %v1112_v16 = vpop.f32.mrb[3].mxu0 }
 0x1b8   : > { %v742_v19 = vpop.f32.mrb[4].mxu1 }
 0x1b9   : > { %v748_v21 = vadd.f32 %v742_v19, %v693_v13  ;;  %v1123_v22 = vpop.f32.mrb[5].mxu1 }
 0x1ba   : > { %v745_v23 = vpop.f32.mrb[6].mxu1 }
 0x1bb   : > { %v756_v24 = vadd.f32 %v1059_v20, %v748_v21  ;;  %v1124_v25 = vpop.f32.mrb[7].mxu1 }
 0x1bd   : > { %v757_v26 = vmax.f32 %v756_v24, 0.0 }
 0x1bf   : > { %v758_v28 = vpack.c.bf16 %v757_v26, %v757_v26 }
 0x1c1   : > { %1142 = vmatmul.mubr.bf16.vlgmr.msra.gmra.mrb[4].mxu0 %v758_v28 }
 0x294   : > { %v864_v32 = vpop.f32.mrb[4].mxu0 }
 0x295   : > { %v865_v33 = vadd.f32 %v1060_v31, %v864_v32  ;;  %v1143_v34 = vpop.f32.mrb[5].mxu0 }
 0x296   : > { %v867_v35 = vpop.f32.mrb[6].mxu0 }
 0x297   : > { %v870_v36 = vmax.f32 %v865_v33, 0.0  ;;  %v1144_v37 = vpop.f32.mrb[7].mxu0 }
 0x299   : > { %v871_v38 = vpack.c.bf16 %v870_v36, %v870_v36 }
 0x29b   : > { %1162 = vmatmul.mubr.bf16.vlgmr.msra.gmra.mrb[8].mxu1 %v871_v38 }
 0x36e   : > { %v977_v39 = vpop.f32.mrb[8].mxu1 }
 0x36f   : > { %v978_v40 = vadd.f32 %v1069_v7, %v977_v39  ;;  %v1163_v41 = vpop.f32.mrb[9].mxu1 }
 0x370   : > { %v980_v42 = vpop.f32.mrb[10].mxu1 }
 0x371   : > { %983 = vst.msk [vmem:[%s354_s18] sm:$0xff] %vm651_vm2, %v978_v40  ;;  %v1164_v43 = vpop.f32.mrb[11].mxu1 }
 0x372 PF: > { %s20_s13 = sadd.s32 1, %s1220_s13  }
 0x373   : > { %p17_p4 = scmp.ge.s32.totalorder %s20_s13, 4  }
 0x375   :  { %19 = sbr.rel (!%p17_p4) target bundleno = 1 (0x1), region = 90 }

</bundles_post_ra>
